<compile_context>
chip_gen: v7x
topology: tpu7x:2x2x1
jax: 0.10.0
libtpu: 0.0.40
codegen_flags: <defaults>
</compile_context>

<pallas_src>
import jax
import jax.numpy as jnp
from jax.experimental import pallas as pl
from jax.experimental.pallas import tpu as pltpu


# ----------------------------------------------------------------------------
# Optimal path: identity needs no kernel at all.
# ----------------------------------------------------------------------------
def identity_passthrough(x: jax.Array) -> jax.Array:
    """Identity.forward(x) == x. No HBM traffic, no kernel launch."""
    return x


# ----------------------------------------------------------------------------
# Kernel path 1 (default): single HBM->HBM DMA, zero VMEM round trip.
# ----------------------------------------------------------------------------
def _identity_dma_kernel(x_hbm_ref, o_hbm_ref, copy_sem):
    # Direct HBM->HBM copy: no VMEM, no vector load/store slots, no (8,128)
    # layout constraints, no VMEM-OOM cliff for large inputs.
    copy = pltpu.make_async_copy(x_hbm_ref, o_hbm_ref, copy_sem)
    copy.start()
    copy.wait()


def identity(x: jax.Array) -> jax.Array:
    """Pallas implementation of Identity.forward(x) as a single HBM->HBM DMA."""
    nbytes = x.size * x.dtype.itemsize
    return pl.pallas_call(
        _identity_dma_kernel,
        out_shape=jax.ShapeDtypeStruct(x.shape, x.dtype),
        in_specs=[pl.BlockSpec(memory_space=pl.ANY)],   # raw HBM ref, no auto-DMA
        out_specs=pl.BlockSpec(memory_space=pl.ANY),    # raw HBM ref, no auto-DMA
        scratch_shapes=[pltpu.SemaphoreType.DMA],
        cost_estimate=pl.CostEstimate(
            flops=0, transcendentals=0, bytes_accessed=2 * nbytes),
    )(x)


# ----------------------------------------------------------------------------
# Kernel path 2: tiled, lane-dense, pipelined VMEM copy (per review guidance).
# ----------------------------------------------------------------------------
def _copy_tile_kernel(x_ref, o_ref):
    # Whole-tile copy: unmasked vld/vst since the lane dim is a multiple of 128.
    o_ref[...] = x_ref[...]


def identity_tiled(x: jax.Array,
                   lane_cap: int = 1024,
                   max_rows_per_tile: int = 512) -> jax.Array:
    """Lane-dense tiled copy: flatten to (rows, L) with L a multiple of 128,
    tile rows and pipeline over a 1-D grid (megacore-parallel)."""
    orig_shape = x.shape
    total = int(x.size)
    itemsize = x.dtype.itemsize

    # Pick the largest lane width L <= lane_cap that is a multiple of 128 and
    # divides the total element count exactly (so no padding is needed).
    L = 0
    for k in range(min(lane_cap, total) // 128, 0, -1):
        if total % (128 * k) == 0:
            L = 128 * k
            break
    if L == 0:
        # Total not divisible by 128 lanes: fall back to the DMA copy, which has
        # no layout constraints at all.
        return identity(x)

    rows = total // L
    x2d = x.reshape(rows, L)

    # Row-tile: either the full row extent (block dim == array dim is allowed)
    # or a multiple-of-8 chunk. 512 rows x 1024 lanes x 4 B = 2 MiB per tile,
    # so double-buffered in+out blocks (~8 MiB) fit every generation's default
    # scoped VMEM limit (16 MiB v5e, 32 MiB v6e/v7x) with headroom.
    tr = rows if rows <= max_rows_per_tile else max_rows_per_tile
    grid = (pl.cdiv(rows, tr),)

    out2d = pl.pallas_call(
        _copy_tile_kernel,
        out_shape=jax.ShapeDtypeStruct((rows, L), x.dtype),
        grid=grid,
        in_specs=[pl.BlockSpec((tr, L), lambda i: (i, 0))],
        out_specs=pl.BlockSpec((tr, L), lambda i: (i, 0)),
        compiler_params=pltpu.CompilerParams(
            dimension_semantics=("parallel",)),  # megacore splits the row tiles
        cost_estimate=pl.CostEstimate(
            flops=0, transcendentals=0, bytes_accessed=2 * total * itemsize),
    )(x2d)

    return out2d.reshape(orig_shape)


if __name__ == "__main__":
    key = jax.random.PRNGKey(0)
    # NCHW input, small shapes: batch=2, channels=4, spatial=16x16
    x = jax.random.normal(key, (2, 4, 16, 16), dtype=jnp.float32)

    # Default kernel path: HBM->HBM DMA copy.
    y_dma = jax.block_until_ready(identity(x))
    # Tiled lane-dense VMEM copy path.
    y_tiled = jax.block_until_ready(identity_tiled(x))
    # Optimal passthrough (no kernel).
    y_pass = identity_passthrough(x)

    assert y_dma.shape == x.shape and y_dma.dtype == x.dtype
    assert jnp.array_equal(y_dma, x), "DMA identity kernel output mismatch"
    assert y_tiled.shape == x.shape and y_tiled.dtype == x.dtype
    assert jnp.array_equal(y_tiled, x), "Tiled identity kernel output mismatch"
    assert y_pass is x

    print("KERNEL_OK")
</pallas_src>

<mosaic_0001>
module attributes {stable_mosaic.version = 11 : i64} {
  func.func @_identity_dma_kernel(%arg0: memref<2x4x16x16xf32, #tpu.memory_space<any>>, %arg1: memref<2x4x16x16xf32, #tpu.memory_space<any>>, %arg2: memref<!tpu.dma_semaphore, #tpu.memory_space<semaphore_mem>>) attributes {dimension_semantics = [], scalar_prefetch = 0 : i64, scratch_operands = 1 : i64, tpu.core_type = #tpu.core_type<tc>} {
    tpu.enqueue_dma source(%arg0 : memref<2x4x16x16xf32, #tpu.memory_space<any>>) target(%arg1 : memref<2x4x16x16xf32, #tpu.memory_space<any>>) target_semaphore(%arg2 : memref<!tpu.dma_semaphore, #tpu.memory_space<semaphore_mem>>)
    tpu.wait_dma2 semaphore(%arg2 : memref<!tpu.dma_semaphore, #tpu.memory_space<semaphore_mem>>) src(%arg0 : memref<2x4x16x16xf32, #tpu.memory_space<any>>) dst(%arg1 : memref<2x4x16x16xf32, #tpu.memory_space<any>>)
    return
  }
}

</mosaic_0001>

<bundles_post_ra>
// kernel: tpu_custom_call.1
= control target key start
LH: loop header
LB: loop body
LE: loop exit
PB: predicated region body
PF: predicated region fallthrough
CT: control target
= control target key end

     0   :  { %s36_s6 = smov [#allocation2]   ;;  %s37_s7 = smov [#allocation3]   ;;  %s55_s0 = inlined_call_operand.hbm [shape: f32[2,4,16,16], index: 0, kind: input, shape index: {}]   ;;  %s56_s1 = inlined_call_operand.hbm [shape: f32[2,4,16,16], index: 1, kind: output, shape index: {}]  }
   0x1   :  { %s38_s8 = smov 0  }
   0x2   :  { %18 = dma.general %s55_s0, 2048, %s56_s1, %s36_s6, %s37_s7, [#allocation4], %s38_s8, 0  }
   0x3   :  { %34 = dma.done.wait [#allocation2], 2048 }
   0x4   :  { %35 = vsyncadd [#allocation2], 4294965248 }
   0x5   :  { %24 = vsyncmov [#allocation2] }
   0x8   :  { %s25_s13 = vpop.sfrf %24 }
   0x9   :  { %p30_p0 = scmp.ne.s32.totalorder %s25_s13, 0 }
   0xb   :  { %29 = shalt.err (%p30_p0)  }

</bundles_post_ra>
